<compile_context>
chip_gen: v7x
topology: tpu7x:2x2x1
jax: 0.10.0
libtpu: 0.0.40
codegen_flags: <defaults>
</compile_context>

<pallas_src>
import math

import jax
import jax.numpy as jnp
import numpy as np
from jax.experimental import pallas as pl
from jax.experimental.pallas import tpu as pltpu

_LANE = 128                           # vreg lane width
_SMALL_OUT_BYTES = 512 * 1024         # below this, XLA's native (fusable) broadcast wins
_TARGET_TILE_BYTES = 2 * 1024 * 1024  # ~2 MiB per block target
_PREF_LANE_TILE = 4096                # preferred lane-tile width (elements)


def _sublane_min(dtype) -> int:
    # Minimum sublane depth so packed dtypes don't repack vregs (f32:8, bf16:16, int8:32).
    return max(8, 32 // jnp.dtype(dtype).itemsize)


def _divisor_tile(dim: int, target: int, align: int) -> int:
    """Largest t <= min(dim, target) with t % align == 0 and dim % t == 0, else 0."""
    t = (min(dim, target) // align) * align
    while t >= align:
        if dim % t == 0:
            return t
        t -= align
    return 0


def _broadcast_kernel(x_ref, o_ref):
    # Pure in-register broadcast of the size-1 source dims; dtypes match, so no cast.
    o_ref[...] = jnp.broadcast_to(x_ref[...], o_ref.shape)


def broadcast_to_pallas(x, size):
    """Equivalent of torch's x.npu_broadcast(size) / torch.broadcast_to(x, size).

    `size` must be static (JAX shapes are static).  x is right-aligned against `size`;
    dims of 1 (or missing leading dims) are expanded; -1 keeps the existing dim.
    """
    size = [int(s) for s in size]
    rank = len(size)
    if x.ndim > rank:
        raise ValueError(f"input rank {x.ndim} exceeds target rank {rank}")
    xs_shape = (1,) * (rank - x.ndim) + tuple(x.shape)
    for i, (xd, sd) in enumerate(zip(xs_shape, size)):
        if sd == -1:
            size[i] = sd = xd
        if xd != sd and xd != 1:
            raise ValueError(f"shape {tuple(x.shape)} is not broadcastable to {tuple(size)}")
    size = tuple(size)

    itemsize = jnp.dtype(x.dtype).itemsize
    out_bytes = (math.prod(size) if size else 1) * itemsize

    # ---- fast path: identity broadcast is a pure metadata reshape -------------------------
    if xs_shape == size:
        return x.reshape(size)

    # ---- fast path: small outputs -- launch/per-step overhead dwarfs the copy, and XLA's
    # ---- broadcast can fuse into its consumer and skip materialization entirely -----------
    if out_bytes <= _SMALL_OUT_BYTES:
        return jnp.broadcast_to(x.reshape(xs_shape), size)

    # ---- canonicalize: drop size-1 output dims, merge adjacent same-behaviour dims --------
    groups = []  # [x_extent, out_extent, is_expand]
    for xd, sd in zip(xs_shape, size):
        if sd == 1:
            continue
        expand = (xd == 1)
        if groups and groups[-1][2] == expand:
            groups[-1][0] *= xd
            groups[-1][1] *= sd
        else:
            groups.append([xd, sd, expand])
    if not groups:  # all-ones output (defensive; caught by fast paths in practice)
        return jnp.broadcast_to(x.reshape(xs_shape), size)
    xc = [g[0] for g in groups]
    oc = [g[1] for g in groups]
    ex = [g[2] for g in groups]

    # ---- 1-D canonical output == scalar fill: re-tile into a lane-dense 2-D view ----------
    if len(oc) == 1:
        # A single non-identity canonical group is always an expand => input is one element.
        N = oc[0]
        cols = _divisor_tile(N, _PREF_LANE_TILE, _LANE)
        if cols == 0:
            rows, cols = 1, N            # rare: no 128-multiple divisor -> (1, N) view
        else:
            rows = N // cols
        xc, oc, ex = [1, 1], [rows, cols], [True, True]

    n = len(oc)
    x_c = x.reshape(tuple(xc))

    # ---- choose block sizes (greedy from the lane dim outward, ~2 MiB per step) -----------
    # Separate budgets for the output block and the (lane/sublane-padded) input block keep
    # the double-buffered VMEM footprint bounded on every generation.
    sub_min = _sublane_min(x.dtype)
    target_elems = max(_LANE, _TARGET_TILE_BYTES // itemsize)
    ob = [1] * n

    # Lane (last) dim: multiple of 128 or the full dim; widen past the preferred width when
    # there are too few rows to otherwise reach the per-step byte target.
    C = oc[-1]
    total_rows = math.prod(oc[:-1])
    lane_budget = min(target_elems, max(_PREF_LANE_TILE, target_elems // max(1, total_rows)))
    if C <= lane_budget:
        tC = C
    else:
        tC = _divisor_tile(C, lane_budget, _LANE)
        if tC == 0:
            tC = (lane_budget // _LANE) * _LANE   # ragged last block, masked by Pallas
    ob[-1] = tC

    tC_pad = -(-tC // _LANE) * _LANE              # padded lane width in VMEM
    tC_in_pad = _LANE if ex[-1] else tC_pad       # expand lane dim => (rows,1) input, 128x pad
    out_rows = max(1, _TARGET_TILE_BYTES // (tC_pad * itemsize))
    in_rows = max(1, _TARGET_TILE_BYTES // (tC_in_pad * itemsize))

    # Sublane (second-to-last) dim: multiple of the dtype's sublane depth, or the full dim.
    R = oc[-2]
    tR_cap = out_rows if ex[-2] else min(out_rows, in_rows)
    if R <= tR_cap:
        tR = R
    else:
        tR = _divisor_tile(R, tR_cap, sub_min)
        if tR == 0:
            tR = min(R, max(sub_min, (tR_cap // sub_min) * sub_min))
    ob[-2] = tR
    tR_pad = -(-tR // sub_min) * sub_min
    out_rows = max(1, out_rows // tR_pad)
    in_rows = max(1, in_rows // (sub_min if ex[-2] else tR_pad))

    # Leading dims: no alignment constraint -> largest exact divisor within the budget.
    for i in range(n - 3, -1, -1):
        cap = out_rows if ex[i] else min(out_rows, in_rows)
        if cap <= 1 or oc[i] == 1:
            continue
        d = min(oc[i], cap)
        while oc[i] % d:
            d -= 1
        ob[i] = d
        out_rows = max(1, out_rows // d)
        if not ex[i]:
            in_rows = max(1, in_rows // d)

    # ---- grid: matched dims outer, expand dims innermost (input re-DMA elided there);
    # ---- size-1 grid axes squeezed; larger axes first for a balanced v7x 2-TC split. ------
    nb = [int(pl.cdiv(oc[i], ob[i])) for i in range(n)]
    match_axes = sorted((i for i in range(n) if nb[i] > 1 and not ex[i]), key=lambda i: -nb[i])
    expand_axes = sorted((i for i in range(n) if nb[i] > 1 and ex[i]), key=lambda i: -nb[i])
    grid_dims = match_axes + expand_axes
    grid = tuple(nb[i] for i in grid_dims) if grid_dims else (1,)
    pos = {d: a for a, d in enumerate(grid_dims)}       # canonical dim -> grid axis

    def o_index(*g):
        return tuple(g[pos[i]] if i in pos else 0 for i in range(n))

    def x_index(*g):
        # Expand dims always read block 0 -> constant input block index across the innermost
        # (expand) grid axes, so Pallas skips the redundant input DMA.
        return tuple(0 if ex[i] else (g[pos[i]] if i in pos else 0) for i in range(n))

    out_block = tuple(ob)
    x_block = tuple(1 if ex[i] else ob[i] for i in range(n))

    # TODO(synk): sub-128 trailing *match* dims (e.g. (1,64)->(B,64)) still go through masked
    # narrow stores; folding repetitions into a >=512-wide lane axis would lift that.
    out_c = pl.pallas_call(
        _broadcast_kernel,
        out_shape=jax.ShapeDtypeStruct(tuple(oc), x.dtype),
        grid=grid,
        in_specs=[pl.BlockSpec(x_block, x_index)],
        out_specs=pl.BlockSpec(out_block, o_index),
        # Disjoint output tiles on every axis -> fully "parallel".  Pipeline depth stays at
        # the default Buffered(2): zero compute + tiny input DMA already overlaps fully.
        compiler_params=pltpu.CompilerParams(
            dimension_semantics=("parallel",) * len(grid)),
        # Purely memory-bound custom call: help XLA overlap surrounding ops.
        cost_estimate=pl.CostEstimate(
            flops=0, transcendentals=0,
            bytes_accessed=int(x.size) * itemsize + out_bytes),
    )(x_c)
    return out_c.reshape(size)


if __name__ == "__main__":
    keys = jax.random.split(jax.random.PRNGKey(0), 6)

    def check(x, size):
        out = jax.block_until_ready(broadcast_to_pallas(x, size))
        ref = np.broadcast_to(np.asarray(x), size)
        assert out.shape == tuple(size), (out.shape, size)
        assert out.dtype == x.dtype, (out.dtype, x.dtype)
        np.testing.assert_array_equal(np.asarray(out, dtype=np.float32),
                                      np.asarray(ref, dtype=np.float32))

    # Small spec-like shapes -> fast paths (XLA native broadcast / metadata reshape).
    check(jax.random.normal(keys[0], (2, 1, 16, 1), dtype=jnp.float32), (2, 4, 16, 16))
    x_id = jax.random.normal(keys[1], (2, 4, 16, 16), dtype=jnp.float32)
    check(x_id, (2, 4, 16, 16))

    # Pallas path: leading + sublane expansion merged into one lane-dense ~2 MiB block.
    check(jax.random.normal(keys[2], (4, 1, 256), dtype=jnp.float32), (2, 4, 256, 256))

    # Pallas path: lane-dim expansion -> (rows, 1) input block, 2-step grid on the row axis.
    check(jax.random.normal(keys[3], (512, 1), dtype=jnp.float32), (512, 2048))

    # Pallas path: sublane expansion with a multi-block grid; input DMA'd once (elided).
    check(jax.random.normal(keys[4], (1, 1024), dtype=jnp.float32), (1024, 1024))

    # Pallas path: bf16 (16-deep sublane packing) sublane broadcast, single block.
    check(jax.random.normal(keys[5], (1, 512), dtype=jnp.bfloat16), (1024, 512))

    # Pallas path: scalar fill -> 1-D canonical branch re-tiled into a lane-dense 2-D view.
    check(jax.random.normal(keys[0], (), dtype=jnp.float32), (256, 1024))

    print("KERNEL_OK")
</pallas_src>

<mosaic_0001>
module attributes {stable_mosaic.version = 11 : i64} {
  func.func @_broadcast_kernel(%arg0: i32, %arg1: memref<1x4x1x256xf32, #tpu.memory_space<vmem>>, %arg2: memref<2x4x256x256xf32, #tpu.memory_space<vmem>>) attributes {dimension_semantics = [#tpu.dimension_semantics<parallel>], iteration_bounds = array<i64: 1>, scalar_prefetch = 0 : i64, scratch_operands = 0 : i64, tpu.core_type = #tpu.core_type<tc>, window_params = [{pipeline_mode = #tpu.pipeline_mode<synchronous>, transform_indices = @transform_0, window_bounds = array<i64: 1, 4, 1, 256>}, {pipeline_mode = #tpu.pipeline_mode<synchronous>, transform_indices = @transform_1, window_bounds = array<i64: 2, 4, 256, 256>}]} {
    %c0 = arith.constant 0 : index
    %c0_0 = arith.constant 0 : index
    %c0_1 = arith.constant 0 : index
    %c0_2 = arith.constant 0 : index
    %0 = vector.load %arg1[%c0, %c0_0, %c0_1, %c0_2] : memref<1x4x1x256xf32, #tpu.memory_space<vmem>>, vector<1x4x1x256xf32>
    %1 = vector.shape_cast %0 : vector<1x4x1x256xf32> to vector<1x4x1x256xf32>
    %2 = vector.broadcast %1 : vector<1x4x1x256xf32> to vector<2x4x256x256xf32>
    %c0_3 = arith.constant 0 : index
    %c0_4 = arith.constant 0 : index
    %c0_5 = arith.constant 0 : index
    %c0_6 = arith.constant 0 : index
    %3 = vector.load %arg2[%c0_3, %c0_4, %c0_5, %c0_6] : memref<2x4x256x256xf32, #tpu.memory_space<vmem>>, vector<2x4x256x256xf32>
    tpu.vector_store %arg2[%c0_3, %c0_4, %c0_5, %c0_6], %2 {strides = array<i32>} : memref<2x4x256x256xf32, #tpu.memory_space<vmem>>, vector<2x4x256x256xf32>,
    return
  }
  func.func @transform_0(%arg0: i32) -> (i32, i32, i32, i32) {
    %c0_i32 = arith.constant 0 : i32
    %c0_i32_0 = arith.constant 0 : i32
    %c0_i32_1 = arith.constant 0 : i32
    %c0_i32_2 = arith.constant 0 : i32
    %c0_i32_3 = arith.constant 0 : i32
    return %c0_i32, %c0_i32_0, %c0_i32_1, %c0_i32_2 : i32, i32, i32, i32
  }
  func.func @transform_1(%arg0: i32) -> (i32, i32, i32, i32) {
    %c0_i32 = arith.constant 0 : i32
    %c0_i32_0 = arith.constant 0 : i32
    %c0_i32_1 = arith.constant 0 : i32
    %c0_i32_2 = arith.constant 0 : i32
    %c0_i32_3 = arith.constant 0 : i32
    return %c0_i32, %c0_i32_0, %c0_i32_1, %c0_i32_2 : i32, i32, i32, i32
  }
}

</mosaic_0001>

<bundles_post_ra>
// kernel: tpu_custom_call.1
= control target key start
LH: loop header
LB: loop body
LE: loop exit
PB: predicated region body
PF: predicated region fallthrough
CT: control target
= control target key end

     0   :  { %6 = vsyncpa [#allocation3], 0  ;;  %s1229_s0 = inlined_call_operand.hbm [shape: f32[1,4,1,256], index: 0, kind: input, shape index: {}]   ;;  %s1230_s1 = inlined_call_operand.hbm [shape: f32[2,4,256,256], index: 1, kind: output, shape index: {}]  }
   0x1   :  { %7 = vsyncpa [#allocation4], 0  ;;  %s654_s6 = smov [#allocation2]   ;;  %s606_s10 = scalar_lea.hbm %s1229_s0, 128 }
   0x2   :  { %s13_s7 = sshll.u32 %s654_s6, 4  ;;  %p607_p0 = scmp.ne.s32.totalorder %s1229_s0, %s606_s10  ;;  %s14_s7 = int_to_ptr.vmem [resolvable:$true] %s13_s7 }
   0x3   :  { %p610_p1 = scmp.lt.u32.totalorder %s606_s10, %s1229_s0 }
   0x5   :  { %p612_p2 = pnand %p610_p1, %p607_p0 }
   0x7   :  { %615 = shalt.err (!%p612_p2)
}
   0x8   :  { %s616_s15 = scalar_lea.vmem %s14_s7, 128  ;;  %p621_p4 = scmp.lt.s32.totalorder %s14_s7, %s14_s7 }
   0x9   :  { %p617_p3 = scmp.ne.s32.totalorder %s14_s7, %s616_s15  ;;  %p622_p5 = scmp.lt.s32.totalorder %s616_s15, %s616_s15 }
   0xb   :  { %p623_p6 = por %p622_p5, %p621_p4 }
   0xd   :  { %p624_p7 = pnand %p623_p6, %p617_p3 }
   0xf   :  { %627 = shalt.err (!%p624_p7)
}
  0x10   :  { %s655_s16 = smov 32   ;;  %s656_s17 = smov 2  }
  0x11   :  { %19 = dma.hbm_to_vmem [thread:$0]  %s1229_s0, 128, %s14_s7, [#allocation3], %s655_s16, %s655_s16, %s656_s17  }
  0x12   :  { %650 = dma.done.wait [#allocation3], 128  }
  0x13   :  { %651 = vsyncadd [#allocation3], 4294967168  ;;  %v31_v0 = vlaneseq  ;;  %s657_s20 = smov [#allocation5]   ;;  %v23_v4 = vld [vmem:[#allocation2] sm:$0x3] }
  0x14   :  { %s588_s21 = sshll.u32 %s657_s20, 4  ;;  %v24_v5 = vld [vmem:[#allocation2 + $0x2] sm:$0x3]  ;;  %v25_v6 = vld [vmem:[#allocation2 + $0x4] sm:$0x3]  ;;  %s698_s21 = int_to_ptr.vmem [resolvable:$true] %s588_s21 }
  0x15   :  { %v32_v1 = vshrl.u32 %v31_v0, 7  ;;  %v26_v11 = vld [vmem:[#allocation2 + $0x6] sm:$0x3]  ;;  %s628_s0 = scalar_lea.vmem %s698_s21, 65536  ;;  %p633_p9 = scmp.lt.s32.totalorder %s698_s21, %s698_s21 }
  0x16   :  { %p629_p8 = scmp.ne.s32.totalorder %s698_s21, %s628_s0  ;;  %p634_p10 = scmp.lt.s32.totalorder %s628_s0, %s628_s0 }
  0x17   :  { %v33_v2 = vsub.s32 0, %v32_v1  ;;  %v37_v3 = vsub.s32 1, %v32_v1 }
  0x18   :  { %p635_p11 = por %p634_p10, %p633_p9 }
  0x19   :  { %v682_v7 = vrot.slane %v23_v4, %v33_v2  ;;  %v684_v8 = vrot.slane %v23_v4, %v37_v3  ;;  %v686_v9 = vrot.slane %v24_v5, %v33_v2  ;;  %v688_v10 = vrot.slane %v24_v5, %v37_v3 }
  0x1a   :  { %v690_v12 = vrot.slane %v25_v6, %v33_v2  ;;  %v692_v13 = vrot.slane %v25_v6, %v37_v3  ;;  %v694_v14 = vrot.slane %v26_v11, %v33_v2  ;;  %v696_v15 = vrot.slane %v26_v11, %v37_v3  ;;  %p636_p12 = pnand %p635_p11, %p629_p8 }
  0x1b   :  { %71 = vst [vmem:[#allocation5] sm:$0xff] %v682_v7  ;;  %73 = vst [vmem:[#allocation5 + $0x10] sm:$0xff] %v682_v7 }
  0x1c   :  { %75 = vst [vmem:[#allocation5 + $0x20] sm:$0xff] %v682_v7  ;;  %77 = vst [vmem:[#allocation5 + $0x30] sm:$0xff] %v682_v7 }
  0x1d   :  { %79 = vst [vmem:[#allocation5 + $0x40] sm:$0xff] %v682_v7  ;;  %81 = vst [vmem:[#allocation5 + $0x50] sm:$0xff] %v682_v7 }
  0x1e   :  { %83 = vst [vmem:[#allocation5 + $0x60] sm:$0xff] %v682_v7  ;;  %85 = vst [vmem:[#allocation5 + $0x70] sm:$0xff] %v682_v7 }
  0x1f   :  { %87 = vst [vmem:[#allocation5 + $0x80] sm:$0xff] %v682_v7  ;;  %89 = vst [vmem:[#allocation5 + $0x90] sm:$0xff] %v682_v7 }
  0x20   :  { %91 = vst [vmem:[#allocation5 + $0xa0] sm:$0xff] %v682_v7  ;;  %93 = vst [vmem:[#allocation5 + $0xb0] sm:$0xff] %v682_v7 }
  0x21   :  { %95 = vst [vmem:[#allocation5 + $0xc0] sm:$0xff] %v682_v7  ;;  %97 = vst [vmem:[#allocation5 + $0xd0] sm:$0xff] %v682_v7 }
  0x22   :  { %99 = vst [vmem:[#allocation5 + $0xe0] sm:$0xff] %v682_v7  ;;  %101 = vst [vmem:[#allocation5 + $0xf0] sm:$0xff] %v682_v7 }
  0x23   :  { %103 = vst [vmem:[#allocation5 + $0x100] sm:$0xff] %v682_v7  ;;  %105 = vst [vmem:[#allocation5 + $0x110] sm:$0xff] %v682_v7 }
  0x24   :  { %107 = vst [vmem:[#allocation5 + $0x120] sm:$0xff] %v682_v7  ;;  %109 = vst [vmem:[#allocation5 + $0x130] sm:$0xff] %v682_v7 }
  0x25   :  { %111 = vst [vmem:[#allocation5 + $0x140] sm:$0xff] %v682_v7  ;;  %113 = vst [vmem:[#allocation5 + $0x150] sm:$0xff] %v682_v7 }
  0x26   :  { %115 = vst [vmem:[#allocation5 + $0x160] sm:$0xff] %v682_v7  ;;  %117 = vst [vmem:[#allocation5 + $0x170] sm:$0xff] %v682_v7 }
  0x27   :  { %119 = vst [vmem:[#allocation5 + $0x180] sm:$0xff] %v682_v7  ;;  %121 = vst [vmem:[#allocation5 + $0x190] sm:$0xff] %v682_v7 }
  0x28   :  { %123 = vst [vmem:[#allocation5 + $0x1a0] sm:$0xff] %v682_v7  ;;  %125 = vst [vmem:[#allocation5 + $0x1b0] sm:$0xff] %v682_v7 }
  0x29   :  { %127 = vst [vmem:[#allocation5 + $0x1c0] sm:$0xff] %v682_v7  ;;  %129 = vst [vmem:[#allocation5 + $0x1d0] sm:$0xff] %v682_v7 }
  0x2a   :  { %131 = vst [vmem:[#allocation5 + $0x1e0] sm:$0xff] %v682_v7  ;;  %133 = vst [vmem:[#allocation5 + $0x1f0] sm:$0xff] %v682_v7 }
  0x2b   :  { %327 = vst [vmem:[#allocation5 + $0x800] sm:$0xff] %v682_v7  ;;  %329 = vst [vmem:[#allocation5 + $0x810] sm:$0xff] %v682_v7 }
  0x2c   :  { %331 = vst [vmem:[#allocation5 + $0x820] sm:$0xff] %v682_v7  ;;  %333 = vst [vmem:[#allocation5 + $0x830] sm:$0xff] %v682_v7 }
  0x2d   :  { %335 = vst [vmem:[#allocation5 + $0x840] sm:$0xff] %v682_v7  ;;  %337 = vst [vmem:[#allocation5 + $0x850] sm:$0xff] %v682_v7 }
  0x2e   :  { %339 = vst [vmem:[#allocation5 + $0x860] sm:$0xff] %v682_v7  ;;  %341 = vst [vmem:[#allocation5 + $0x870] sm:$0xff] %v682_v7 }
  0x2f   :  { %343 = vst [vmem:[#allocation5 + $0x880] sm:$0xff] %v682_v7  ;;  %345 = vst [vmem:[#allocation5 + $0x890] sm:$0xff] %v682_v7 }
  0x30   :  { %347 = vst [vmem:[#allocation5 + $0x8a0] sm:$0xff] %v682_v7  ;;  %349 = vst [vmem:[#allocation5 + $0x8b0] sm:$0xff] %v682_v7 }
  0x31   :  { %351 = vst [vmem:[#allocation5 + $0x8c0] sm:$0xff] %v682_v7  ;;  %353 = vst [vmem:[#allocation5 + $0x8d0] sm:$0xff] %v682_v7 }
  0x32   :  { %355 = vst [vmem:[#allocation5 + $0x8e0] sm:$0xff] %v682_v7  ;;  %357 = vst [vmem:[#allocation5 + $0x8f0] sm:$0xff] %v682_v7 }
  0x33   :  { %359 = vst [vmem:[#allocation5 + $0x900] sm:$0xff] %v682_v7  ;;  %361 = vst [vmem:[#allocation5 + $0x910] sm:$0xff] %v682_v7 }
  0x34   :  { %363 = vst [vmem:[#allocation5 + $0x920] sm:$0xff] %v682_v7  ;;  %365 = vst [vmem:[#allocation5 + $0x930] sm:$0xff] %v682_v7 }
  0x35   :  { %367 = vst [vmem:[#allocation5 + $0x940] sm:$0xff] %v682_v7  ;;  %369 = vst [vmem:[#allocation5 + $0x950] sm:$0xff] %v682_v7 }
  0x36   :  { %371 = vst [vmem:[#allocation5 + $0x960] sm:$0xff] %v682_v7  ;;  %373 = vst [vmem:[#allocation5 + $0x970] sm:$0xff] %v682_v7 }
  0x37   :  { %375 = vst [vmem:[#allocation5 + $0x980] sm:$0xff] %v682_v7  ;;  %377 = vst [vmem:[#allocation5 + $0x990] sm:$0xff] %v682_v7 }
  0x38   :  { %379 = vst [vmem:[#allocation5 + $0x9a0] sm:$0xff] %v682_v7  ;;  %381 = vst [vmem:[#allocation5 + $0x9b0] sm:$0xff] %v682_v7 }
  0x39   :  { %383 = vst [vmem:[#allocation5 + $0x9c0] sm:$0xff] %v682_v7  ;;  %385 = vst [vmem:[#allocation5 + $0x9d0] sm:$0xff] %v682_v7 }
  0x3a   :  { %387 = vst [vmem:[#allocation5 + $0x9e0] sm:$0xff] %v682_v7  ;;  %389 = vst [vmem:[#allocation5 + $0x9f0] sm:$0xff] %v682_v7 }
  0x3b   :  { %72 = vst [vmem:[#allocation5 + $0x8] sm:$0xff] %v684_v8  ;;  %74 = vst [vmem:[#allocation5 + $0x18] sm:$0xff] %v684_v8 }
  0x3c   :  { %76 = vst [vmem:[#allocation5 + $0x28] sm:$0xff] %v684_v8  ;;  %78 = vst [vmem:[#allocation5 + $0x38] sm:$0xff] %v684_v8 }
  0x3d   :  { %80 = vst [vmem:[#allocation5 + $0x48] sm:$0xff] %v684_v8  ;;  %82 = vst [vmem:[#allocation5 + $0x58] sm:$0xff] %v684_v8 }
  0x3e   :  { %84 = vst [vmem:[#allocation5 + $0x68] sm:$0xff] %v684_v8  ;;  %86 = vst [vmem:[#allocation5 + $0x78] sm:$0xff] %v684_v8 }
  0x3f   :  { %88 = vst [vmem:[#allocation5 + $0x88] sm:$0xff] %v684_v8  ;;  %90 = vst [vmem:[#allocation5 + $0x98] sm:$0xff] %v684_v8 }
  0x40   :  { %92 = vst [vmem:[#allocation5 + $0xa8] sm:$0xff] %v684_v8  ;;  %94 = vst [vmem:[#allocation5 + $0xb8] sm:$0xff] %v684_v8 }
  0x41   :  { %96 = vst [vmem:[#allocation5 + $0xc8] sm:$0xff] %v684_v8  ;;  %98 = vst [vmem:[#allocation5 + $0xd8] sm:$0xff] %v684_v8 }
  0x42   :  { %100 = vst [vmem:[#allocation5 + $0xe8] sm:$0xff] %v684_v8  ;;  %102 = vst [vmem:[#allocation5 + $0xf8] sm:$0xff] %v684_v8 }
  0x43   :  { %104 = vst [vmem:[#allocation5 + $0x108] sm:$0xff] %v684_v8  ;;  %106 = vst [vmem:[#allocation5 + $0x118] sm:$0xff] %v684_v8 }
  0x44   :  { %108 = vst [vmem:[#allocation5 + $0x128] sm:$0xff] %v684_v8  ;;  %110 = vst [vmem:[#allocation5 + $0x138] sm:$0xff] %v684_v8 }
  0x45   :  { %112 = vst [vmem:[#allocation5 + $0x148] sm:$0xff] %v684_v8  ;;  %114 = vst [vmem:[#allocation5 + $0x158] sm:$0xff] %v684_v8 }
  0x46   :  { %116 = vst [vmem:[#allocation5 + $0x168] sm:$0xff] %v684_v8  ;;  %118 = vst [vmem:[#allocation5 + $0x178] sm:$0xff] %v684_v8 }
  0x47   :  { %120 = vst [vmem:[#allocation5 + $0x188] sm:$0xff] %v684_v8  ;;  %122 = vst [vmem:[#allocation5 + $0x198] sm:$0xff] %v684_v8 }
  0x48   :  { %124 = vst [vmem:[#allocation5 + $0x1a8] sm:$0xff] %v684_v8  ;;  %126 = vst [vmem:[#allocation5 + $0x1b8] sm:$0xff] %v684_v8 }
  0x49   :  { %128 = vst [vmem:[#allocation5 + $0x1c8] sm:$0xff] %v684_v8  ;;  %130 = vst [vmem:[#allocation5 + $0x1d8] sm:$0xff] %v684_v8 }
  0x4a   :  { %132 = vst [vmem:[#allocation5 + $0x1e8] sm:$0xff] %v684_v8  ;;  %134 = vst [vmem:[#allocation5 + $0x1f8] sm:$0xff] %v684_v8 }
  0x4b   :  { %328 = vst [vmem:[#allocation5 + $0x808] sm:$0xff] %v684_v8  ;;  %330 = vst [vmem:[#allocation5 + $0x818] sm:$0xff] %v684_v8 }
  0x4c   :  { %332 = vst [vmem:[#allocation5 + $0x828] sm:$0xff] %v684_v8  ;;  %334 = vst [vmem:[#allocation5 + $0x838] sm:$0xff] %v684_v8 }
  0x4d   :  { %336 = vst [vmem:[#allocation5 + $0x848] sm:$0xff] %v684_v8  ;;  %338 = vst [vmem:[#allocation5 + $0x858] sm:$0xff] %v684_v8 }
  0x4e   :  { %340 = vst [vmem:[#allocation5 + $0x868] sm:$0xff] %v684_v8  ;;  %342 = vst [vmem:[#allocation5 + $0x878] sm:$0xff] %v684_v8 }
  0x4f   :  { %344 = vst [vmem:[#allocation5 + $0x888] sm:$0xff] %v684_v8  ;;  %346 = vst [vmem:[#allocation5 + $0x898] sm:$0xff] %v684_v8 }
  0x50   :  { %348 = vst [vmem:[#allocation5 + $0x8a8] sm:$0xff] %v684_v8  ;;  %350 = vst [vmem:[#allocation5 + $0x8b8] sm:$0xff] %v684_v8 }
  0x51   :  { %352 = vst [vmem:[#allocation5 + $0x8c8] sm:$0xff] %v684_v8  ;;  %354 = vst [vmem:[#allocation5 + $0x8d8] sm:$0xff] %v684_v8 }
  0x52   :  { %356 = vst [vmem:[#allocation5 + $0x8e8] sm:$0xff] %v684_v8  ;;  %358 = vst [vmem:[#allocation5 + $0x8f8] sm:$0xff] %v684_v8 }
  0x53   :  { %360 = vst [vmem:[#allocation5 + $0x908] sm:$0xff] %v684_v8  ;;  %362 = vst [vmem:[#allocation5 + $0x918] sm:$0xff] %v684_v8 }
  0x54   :  { %364 = vst [vmem:[#allocation5 + $0x928] sm:$0xff] %v684_v8  ;;  %366 = vst [vmem:[#allocation5 + $0x938] sm:$0xff] %v684_v8 }
  0x55   :  { %368 = vst [vmem:[#allocation5 + $0x948] sm:$0xff] %v684_v8  ;;  %370 = vst [vmem:[#allocation5 + $0x958] sm:$0xff] %v684_v8 }
  0x56   :  { %372 = vst [vmem:[#allocation5 + $0x968] sm:$0xff] %v684_v8  ;;  %374 = vst [vmem:[#allocation5 + $0x978] sm:$0xff] %v684_v8 }
  0x57   :  { %376 = vst [vmem:[#allocation5 + $0x988] sm:$0xff] %v684_v8  ;;  %378 = vst [vmem:[#allocation5 + $0x998] sm:$0xff] %v684_v8 }
  0x58   :  { %380 = vst [vmem:[#allocation5 + $0x9a8] sm:$0xff] %v684_v8  ;;  %382 = vst [vmem:[#allocation5 + $0x9b8] sm:$0xff] %v684_v8 }
  0x59   :  { %384 = vst [vmem:[#allocation5 + $0x9c8] sm:$0xff] %v684_v8  ;;  %386 = vst [vmem:[#allocation5 + $0x9d8] sm:$0xff] %v684_v8 }
  0x5a   :  { %388 = vst [vmem:[#allocation5 + $0x9e8] sm:$0xff] %v684_v8  ;;  %390 = vst [vmem:[#allocation5 + $0x9f8] sm:$0xff] %v684_v8 }
  0x5b   :  { %135 = vst [vmem:[#allocation5 + $0x200] sm:$0xff] %v686_v9  ;;  %137 = vst [vmem:[#allocation5 + $0x210] sm:$0xff] %v686_v9 }
  0x5c   :  { %139 = vst [vmem:[#allocation5 + $0x220] sm:$0xff] %v686_v9  ;;  %141 = vst [vmem:[#allocation5 + $0x230] sm:$0xff] %v686_v9 }
  0x5d   :  { %143 = vst [vmem:[#allocation5 + $0x240] sm:$0xff] %v686_v9  ;;  %145 = vst [vmem:[#allocation5 + $0x250] sm:$0xff] %v686_v9 }
  0x5e   :  { %147 = vst [vmem:[#allocation5 + $0x260] sm:$0xff] %v686_v9  ;;  %149 = vst [vmem:[#allocation5 + $0x270] sm:$0xff] %v686_v9 }
  0x5f   :  { %151 = vst [vmem:[#allocation5 + $0x280] sm:$0xff] %v686_v9  ;;  %153 = vst [vmem:[#allocation5 + $0x290] sm:$0xff] %v686_v9 }
  0x60   :  { %155 = vst [vmem:[#allocation5 + $0x2a0] sm:$0xff] %v686_v9  ;;  %157 = vst [vmem:[#allocation5 + $0x2b0] sm:$0xff] %v686_v9 }
  0x61   :  { %159 = vst [vmem:[#allocation5 + $0x2c0] sm:$0xff] %v686_v9  ;;  %161 = vst [vmem:[#allocation5 + $0x2d0] sm:$0xff] %v686_v9 }
  0x62   :  { %163 = vst [vmem:[#allocation5 + $0x2e0] sm:$0xff] %v686_v9  ;;  %165 = vst [vmem:[#allocation5 + $0x2f0] sm:$0xff] %v686_v9 }
  0x63   :  { %167 = vst [vmem:[#allocation5 + $0x300] sm:$0xff] %v686_v9  ;;  %169 = vst [vmem:[#allocation5 + $0x310] sm:$0xff] %v686_v9 }
  0x64   :  { %171 = vst [vmem:[#allocation5 + $0x320] sm:$0xff] %v686_v9  ;;  %173 = vst [vmem:[#allocation5 + $0x330] sm:$0xff] %v686_v9 }
  0x65   :  { %175 = vst [vmem:[#allocation5 + $0x340] sm:$0xff] %v686_v9  ;;  %177 = vst [vmem:[#allocation5 + $0x350] sm:$0xff] %v686_v9 }
  0x66   :  { %179 = vst [vmem:[#allocation5 + $0x360] sm:$0xff] %v686_v9  ;;  %181 = vst [vmem:[#allocation5 + $0x370] sm:$0xff] %v686_v9 }
  0x67   :  { %183 = vst [vmem:[#allocation5 + $0x380] sm:$0xff] %v686_v9  ;;  %185 = vst [vmem:[#allocation5 + $0x390] sm:$0xff] %v686_v9 }
  0x68   :  { %187 = vst [vmem:[#allocation5 + $0x3a0] sm:$0xff] %v686_v9  ;;  %189 = vst [vmem:[#allocation5 + $0x3b0] sm:$0xff] %v686_v9 }
  0x69   :  { %191 = vst [vmem:[#allocation5 + $0x3c0] sm:$0xff] %v686_v9  ;;  %193 = vst [vmem:[#allocation5 + $0x3d0] sm:$0xff] %v686_v9 }
  0x6a   :  { %195 = vst [vmem:[#allocation5 + $0x3e0] sm:$0xff] %v686_v9  ;;  %197 = vst [vmem:[#allocation5 + $0x3f0] sm:$0xff] %v686_v9 }
  0x6b   :  { %391 = vst [vmem:[#allocation5 + $0xa00] sm:$0xff] %v686_v9  ;;  %393 = vst [vmem:[#allocation5 + $0xa10] sm:$0xff] %v686_v9 }
  0x6c   :  { %395 = vst [vmem:[#allocation5 + $0xa20] sm:$0xff] %v686_v9  ;;  %397 = vst [vmem:[#allocation5 + $0xa30] sm:$0xff] %v686_v9 }
  0x6d   :  { %399 = vst [vmem:[#allocation5 + $0xa40] sm:$0xff] %v686_v9  ;;  %401 = vst [vmem:[#allocation5 + $0xa50] sm:$0xff] %v686_v9 }
  0x6e   :  { %403 = vst [vmem:[#allocation5 + $0xa60] sm:$0xff] %v686_v9  ;;  %405 = vst [vmem:[#allocation5 + $0xa70] sm:$0xff] %v686_v9 }
  0x6f   :  { %407 = vst [vmem:[#allocation5 + $0xa80] sm:$0xff] %v686_v9  ;;  %409 = vst [vmem:[#allocation5 + $0xa90] sm:$0xff] %v686_v9 }
  0x70   :  { %411 = vst [vmem:[#allocation5 + $0xaa0] sm:$0xff] %v686_v9  ;;  %413 = vst [vmem:[#allocation5 + $0xab0] sm:$0xff] %v686_v9 }
  0x71   :  { %415 = vst [vmem:[#allocation5 + $0xac0] sm:$0xff] %v686_v9  ;;  %417 = vst [vmem:[#allocation5 + $0xad0] sm:$0xff] %v686_v9 }
  0x72   :  { %419 = vst [vmem:[#allocation5 + $0xae0] sm:$0xff] %v686_v9  ;;  %421 = vst [vmem:[#allocation5 + $0xaf0] sm:$0xff] %v686_v9 }
  0x73   :  { %423 = vst [vmem:[#allocation5 + $0xb00] sm:$0xff] %v686_v9  ;;  %425 = vst [vmem:[#allocation5 + $0xb10] sm:$0xff] %v686_v9 }
  0x74   :  { %427 = vst [vmem:[#allocation5 + $0xb20] sm:$0xff] %v686_v9  ;;  %429 = vst [vmem:[#allocation5 + $0xb30] sm:$0xff] %v686_v9 }
  0x75   :  { %431 = vst [vmem:[#allocation5 + $0xb40] sm:$0xff] %v686_v9  ;;  %433 = vst [vmem:[#allocation5 + $0xb50] sm:$0xff] %v686_v9 }
  0x76   :  { %435 = vst [vmem:[#allocation5 + $0xb60] sm:$0xff] %v686_v9  ;;  %437 = vst [vmem:[#allocation5 + $0xb70] sm:$0xff] %v686_v9 }
  0x77   :  { %439 = vst [vmem:[#allocation5 + $0xb80] sm:$0xff] %v686_v9  ;;  %441 = vst [vmem:[#allocation5 + $0xb90] sm:$0xff] %v686_v9 }
  0x78   :  { %443 = vst [vmem:[#allocation5 + $0xba0] sm:$0xff] %v686_v9  ;;  %445 = vst [vmem:[#allocation5 + $0xbb0] sm:$0xff] %v686_v9 }
  0x79   :  { %447 = vst [vmem:[#allocation5 + $0xbc0] sm:$0xff] %v686_v9  ;;  %449 = vst [vmem:[#allocation5 + $0xbd0] sm:$0xff] %v686_v9 }
  0x7a   :  { %451 = vst [vmem:[#allocation5 + $0xbe0] sm:$0xff] %v686_v9  ;;  %453 = vst [vmem:[#allocation5 + $0xbf0] sm:$0xff] %v686_v9 }
  0x7b   :  { %136 = vst [vmem:[#allocation5 + $0x208] sm:$0xff] %v688_v10  ;;  %138 = vst [vmem:[#allocation5 + $0x218] sm:$0xff] %v688_v10 }
  0x7c   :  { %140 = vst [vmem:[#allocation5 + $0x228] sm:$0xff] %v688_v10  ;;  %142 = vst [vmem:[#allocation5 + $0x238] sm:$0xff] %v688_v10 }
  0x7d   :  { %144 = vst [vmem:[#allocation5 + $0x248] sm:$0xff] %v688_v10  ;;  %146 = vst [vmem:[#allocation5 + $0x258] sm:$0xff] %v688_v10 }
  0x7e   :  { %148 = vst [vmem:[#allocation5 + $0x268] sm:$0xff] %v688_v10  ;;  %150 = vst [vmem:[#allocation5 + $0x278] sm:$0xff] %v688_v10 }
  0x7f   :  { %152 = vst [vmem:[#allocation5 + $0x288] sm:$0xff] %v688_v10  ;;  %154 = vst [vmem:[#allocation5 + $0x298] sm:$0xff] %v688_v10 }
  0x80   :  { %156 = vst [vmem:[#allocation5 + $0x2a8] sm:$0xff] %v688_v10  ;;  %158 = vst [vmem:[#allocation5 + $0x2b8] sm:$0xff] %v688_v10 }
  0x81   :  { %160 = vst [vmem:[#allocation5 + $0x2c8] sm:$0xff] %v688_v10  ;;  %162 = vst [vmem:[#allocation5 + $0x2d8] sm:$0xff] %v688_v10 }
  0x82   :  { %164 = vst [vmem:[#allocation5 + $0x2e8] sm:$0xff] %v688_v10  ;;  %166 = vst [vmem:[#allocation5 + $0x2f8] sm:$0xff] %v688_v10 }
  0x83   :  { %168 = vst [vmem:[#allocation5 + $0x308] sm:$0xff] %v688_v10  ;;  %170 = vst [vmem:[#allocation5 + $0x318] sm:$0xff] %v688_v10 }
  0x84   :  { %172 = vst [vmem:[#allocation5 + $0x328] sm:$0xff] %v688_v10  ;;  %174 = vst [vmem:[#allocation5 + $0x338] sm:$0xff] %v688_v10 }
  0x85   :  { %176 = vst [vmem:[#allocation5 + $0x348] sm:$0xff] %v688_v10  ;;  %178 = vst [vmem:[#allocation5 + $0x358] sm:$0xff] %v688_v10 }
  0x86   :  { %180 = vst [vmem:[#allocation5 + $0x368] sm:$0xff] %v688_v10  ;;  %182 = vst [vmem:[#allocation5 + $0x378] sm:$0xff] %v688_v10 }
  0x87   :  { %184 = vst [vmem:[#allocation5 + $0x388] sm:$0xff] %v688_v10  ;;  %186 = vst [vmem:[#allocation5 + $0x398] sm:$0xff] %v688_v10 }
  0x88   :  { %188 = vst [vmem:[#allocation5 + $0x3a8] sm:$0xff] %v688_v10  ;;  %190 = vst [vmem:[#allocation5 + $0x3b8] sm:$0xff] %v688_v10 }
  0x89   :  { %192 = vst [vmem:[#allocation5 + $0x3c8] sm:$0xff] %v688_v10  ;;  %194 = vst [vmem:[#allocation5 + $0x3d8] sm:$0xff] %v688_v10 }
  0x8a   :  { %196 = vst [vmem:[#allocation5 + $0x3e8] sm:$0xff] %v688_v10  ;;  %198 = vst [vmem:[#allocation5 + $0x3f8] sm:$0xff] %v688_v10 }
  0x8b   :  { %392 = vst [vmem:[#allocation5 + $0xa08] sm:$0xff] %v688_v10  ;;  %394 = vst [vmem:[#allocation5 + $0xa18] sm:$0xff] %v688_v10 }
  0x8c   :  { %396 = vst [vmem:[#allocation5 + $0xa28] sm:$0xff] %v688_v10  ;;  %398 = vst [vmem:[#allocation5 + $0xa38] sm:$0xff] %v688_v10 }
  0x8d   :  { %400 = vst [vmem:[#allocation5 + $0xa48] sm:$0xff] %v688_v10  ;;  %402 = vst [vmem:[#allocation5 + $0xa58] sm:$0xff] %v688_v10 }
  0x8e   :  { %404 = vst [vmem:[#allocation5 + $0xa68] sm:$0xff] %v688_v10  ;;  %406 = vst [vmem:[#allocation5 + $0xa78] sm:$0xff] %v688_v10 }
  0x8f   :  { %408 = vst [vmem:[#allocation5 + $0xa88] sm:$0xff] %v688_v10  ;;  %410 = vst [vmem:[#allocation5 + $0xa98] sm:$0xff] %v688_v10 }
  0x90   :  { %412 = vst [vmem:[#allocation5 + $0xaa8] sm:$0xff] %v688_v10  ;;  %414 = vst [vmem:[#allocation5 + $0xab8] sm:$0xff] %v688_v10 }
  0x91   :  { %416 = vst [vmem:[#allocation5 + $0xac8] sm:$0xff] %v688_v10  ;;  %418 = vst [vmem:[#allocation5 + $0xad8] sm:$0xff] %v688_v10 }
  0x92   :  { %420 = vst [vmem:[#allocation5 + $0xae8] sm:$0xff] %v688_v10  ;;  %422 = vst [vmem:[#allocation5 + $0xaf8] sm:$0xff] %v688_v10 }
  0x93   :  { %424 = vst [vmem:[#allocation5 + $0xb08] sm:$0xff] %v688_v10  ;;  %426 = vst [vmem:[#allocation5 + $0xb18] sm:$0xff] %v688_v10 }
  0x94   :  { %428 = vst [vmem:[#allocation5 + $0xb28] sm:$0xff] %v688_v10  ;;  %430 = vst [vmem:[#allocation5 + $0xb38] sm:$0xff] %v688_v10 }
  0x95   :  { %432 = vst [vmem:[#allocation5 + $0xb48] sm:$0xff] %v688_v10  ;;  %434 = vst [vmem:[#allocation5 + $0xb58] sm:$0xff] %v688_v10 }
  0x96   :  { %436 = vst [vmem:[#allocation5 + $0xb68] sm:$0xff] %v688_v10  ;;  %438 = vst [vmem:[#allocation5 + $0xb78] sm:$0xff] %v688_v10 }
  0x97   :  { %440 = vst [vmem:[#allocation5 + $0xb88] sm:$0xff] %v688_v10  ;;  %442 = vst [vmem:[#allocation5 + $0xb98] sm:$0xff] %v688_v10 }
  0x98   :  { %444 = vst [vmem:[#allocation5 + $0xba8] sm:$0xff] %v688_v10  ;;  %446 = vst [vmem:[#allocation5 + $0xbb8] sm:$0xff] %v688_v10 }
  0x99   :  { %448 = vst [vmem:[#allocation5 + $0xbc8] sm:$0xff] %v688_v10  ;;  %450 = vst [vmem:[#allocation5 + $0xbd8] sm:$0xff] %v688_v10 }
  0x9a   :  { %452 = vst [vmem:[#allocation5 + $0xbe8] sm:$0xff] %v688_v10  ;;  %454 = vst [vmem:[#allocation5 + $0xbf8] sm:$0xff] %v688_v10 }
  0x9b   :  { %199 = vst [vmem:[#allocation5 + $0x400] sm:$0xff] %v690_v12  ;;  %201 = vst [vmem:[#allocation5 + $0x410] sm:$0xff] %v690_v12 }
  0x9c   :  { %203 = vst [vmem:[#allocation5 + $0x420] sm:$0xff] %v690_v12  ;;  %205 = vst [vmem:[#allocation5 + $0x430] sm:$0xff] %v690_v12 }
  0x9d   :  { %207 = vst [vmem:[#allocation5 + $0x440] sm:$0xff] %v690_v12  ;;  %209 = vst [vmem:[#allocation5 + $0x450] sm:$0xff] %v690_v12 }
  0x9e   :  { %211 = vst [vmem:[#allocation5 + $0x460] sm:$0xff] %v690_v12  ;;  %213 = vst [vmem:[#allocation5 + $0x470] sm:$0xff] %v690_v12 }
  0x9f   :  { %215 = vst [vmem:[#allocation5 + $0x480] sm:$0xff] %v690_v12  ;;  %217 = vst [vmem:[#allocation5 + $0x490] sm:$0xff] %v690_v12 }
  0xa0   :  { %219 = vst [vmem:[#allocation5 + $0x4a0] sm:$0xff] %v690_v12  ;;  %221 = vst [vmem:[#allocation5 + $0x4b0] sm:$0xff] %v690_v12 }
  0xa1   :  { %223 = vst [vmem:[#allocation5 + $0x4c0] sm:$0xff] %v690_v12  ;;  %225 = vst [vmem:[#allocation5 + $0x4d0] sm:$0xff] %v690_v12 }
  0xa2   :  { %227 = vst [vmem:[#allocation5 + $0x4e0] sm:$0xff] %v690_v12  ;;  %229 = vst [vmem:[#allocation5 + $0x4f0] sm:$0xff] %v690_v12 }
  0xa3   :  { %231 = vst [vmem:[#allocation5 + $0x500] sm:$0xff] %v690_v12  ;;  %233 = vst [vmem:[#allocation5 + $0x510] sm:$0xff] %v690_v12 }
  0xa4   :  { %235 = vst [vmem:[#allocation5 + $0x520] sm:$0xff] %v690_v12  ;;  %237 = vst [vmem:[#allocation5 + $0x530] sm:$0xff] %v690_v12 }
  0xa5   :  { %239 = vst [vmem:[#allocation5 + $0x540] sm:$0xff] %v690_v12  ;;  %241 = vst [vmem:[#allocation5 + $0x550] sm:$0xff] %v690_v12 }
  0xa6   :  { %243 = vst [vmem:[#allocation5 + $0x560] sm:$0xff] %v690_v12  ;;  %245 = vst [vmem:[#allocation5 + $0x570] sm:$0xff] %v690_v12 }
  0xa7   :  { %247 = vst [vmem:[#allocation5 + $0x580] sm:$0xff] %v690_v12  ;;  %249 = vst [vmem:[#allocation5 + $0x590] sm:$0xff] %v690_v12 }
  0xa8   :  { %251 = vst [vmem:[#allocation5 + $0x5a0] sm:$0xff] %v690_v12  ;;  %253 = vst [vmem:[#allocation5 + $0x5b0] sm:$0xff] %v690_v12 }
  0xa9   :  { %255 = vst [vmem:[#allocation5 + $0x5c0] sm:$0xff] %v690_v12  ;;  %257 = vst [vmem:[#allocation5 + $0x5d0] sm:$0xff] %v690_v12 }
  0xaa   :  { %259 = vst [vmem:[#allocation5 + $0x5e0] sm:$0xff] %v690_v12  ;;  %261 = vst [vmem:[#allocation5 + $0x5f0] sm:$0xff] %v690_v12 }
  0xab   :  { %455 = vst [vmem:[#allocation5 + $0xc00] sm:$0xff] %v690_v12  ;;  %457 = vst [vmem:[#allocation5 + $0xc10] sm:$0xff] %v690_v12 }
  0xac   :  { %459 = vst [vmem:[#allocation5 + $0xc20] sm:$0xff] %v690_v12  ;;  %461 = vst [vmem:[#allocation5 + $0xc30] sm:$0xff] %v690_v12 }
  0xad   :  { %463 = vst [vmem:[#allocation5 + $0xc40] sm:$0xff] %v690_v12  ;;  %465 = vst [vmem:[#allocation5 + $0xc50] sm:$0xff] %v690_v12 }
  0xae   :  { %467 = vst [vmem:[#allocation5 + $0xc60] sm:$0xff] %v690_v12  ;;  %469 = vst [vmem:[#allocation5 + $0xc70] sm:$0xff] %v690_v12 }
  0xaf   :  { %471 = vst [vmem:[#allocation5 + $0xc80] sm:$0xff] %v690_v12  ;;  %473 = vst [vmem:[#allocation5 + $0xc90] sm:$0xff] %v690_v12 }
  0xb0   :  { %475 = vst [vmem:[#allocation5 + $0xca0] sm:$0xff] %v690_v12  ;;  %477 = vst [vmem:[#allocation5 + $0xcb0] sm:$0xff] %v690_v12 }
  0xb1   :  { %479 = vst [vmem:[#allocation5 + $0xcc0] sm:$0xff] %v690_v12  ;;  %481 = vst [vmem:[#allocation5 + $0xcd0] sm:$0xff] %v690_v12 }
  0xb2   :  { %483 = vst [vmem:[#allocation5 + $0xce0] sm:$0xff] %v690_v12  ;;  %485 = vst [vmem:[#allocation5 + $0xcf0] sm:$0xff] %v690_v12 }
  0xb3   :  { %487 = vst [vmem:[#allocation5 + $0xd00] sm:$0xff] %v690_v12  ;;  %489 = vst [vmem:[#allocation5 + $0xd10] sm:$0xff] %v690_v12 }
  0xb4   :  { %491 = vst [vmem:[#allocation5 + $0xd20] sm:$0xff] %v690_v12  ;;  %493 = vst [vmem:[#allocation5 + $0xd30] sm:$0xff] %v690_v12 }
  0xb5   :  { %495 = vst [vmem:[#allocation5 + $0xd40] sm:$0xff] %v690_v12  ;;  %497 = vst [vmem:[#allocation5 + $0xd50] sm:$0xff] %v690_v12 }
  0xb6   :  { %499 = vst [vmem:[#allocation5 + $0xd60] sm:$0xff] %v690_v12  ;;  %501 = vst [vmem:[#allocation5 + $0xd70] sm:$0xff] %v690_v12 }
  0xb7   :  { %503 = vst [vmem:[#allocation5 + $0xd80] sm:$0xff] %v690_v12  ;;  %505 = vst [vmem:[#allocation5 + $0xd90] sm:$0xff] %v690_v12 }
  0xb8   :  { %507 = vst [vmem:[#allocation5 + $0xda0] sm:$0xff] %v690_v12  ;;  %509 = vst [vmem:[#allocation5 + $0xdb0] sm:$0xff] %v690_v12 }
  0xb9   :  { %511 = vst [vmem:[#allocation5 + $0xdc0] sm:$0xff] %v690_v12  ;;  %513 = vst [vmem:[#allocation5 + $0xdd0] sm:$0xff] %v690_v12 }
  0xba   :  { %515 = vst [vmem:[#allocation5 + $0xde0] sm:$0xff] %v690_v12  ;;  %517 = vst [vmem:[#allocation5 + $0xdf0] sm:$0xff] %v690_v12 }
  0xbb   :  { %200 = vst [vmem:[#allocation5 + $0x408] sm:$0xff] %v692_v13  ;;  %202 = vst [vmem:[#allocation5 + $0x418] sm:$0xff] %v692_v13 }
  0xbc   :  { %204 = vst [vmem:[#allocation5 + $0x428] sm:$0xff] %v692_v13  ;;  %206 = vst [vmem:[#allocation5 + $0x438] sm:$0xff] %v692_v13 }
  0xbd   :  { %208 = vst [vmem:[#allocation5 + $0x448] sm:$0xff] %v692_v13  ;;  %210 = vst [vmem:[#allocation5 + $0x458] sm:$0xff] %v692_v13 }
  0xbe   :  { %212 = vst [vmem:[#allocation5 + $0x468] sm:$0xff] %v692_v13  ;;  %214 = vst [vmem:[#allocation5 + $0x478] sm:$0xff] %v692_v13 }
  0xbf   :  { %216 = vst [vmem:[#allocation5 + $0x488] sm:$0xff] %v692_v13  ;;  %218 = vst [vmem:[#allocation5 + $0x498] sm:$0xff] %v692_v13 }
  0xc0   :  { %220 = vst [vmem:[#allocation5 + $0x4a8] sm:$0xff] %v692_v13  ;;  %222 = vst [vmem:[#allocation5 + $0x4b8] sm:$0xff] %v692_v13 }
  0xc1   :  { %224 = vst [vmem:[#allocation5 + $0x4c8] sm:$0xff] %v692_v13  ;;  %226 = vst [vmem:[#allocation5 + $0x4d8] sm:$0xff] %v692_v13 }
  0xc2   :  { %228 = vst [vmem:[#allocation5 + $0x4e8] sm:$0xff] %v692_v13  ;;  %230 = vst [vmem:[#allocation5 + $0x4f8] sm:$0xff] %v692_v13 }
  0xc3   :  { %232 = vst [vmem:[#allocation5 + $0x508] sm:$0xff] %v692_v13  ;;  %234 = vst [vmem:[#allocation5 + $0x518] sm:$0xff] %v692_v13 }
  0xc4   :  { %236 = vst [vmem:[#allocation5 + $0x528] sm:$0xff] %v692_v13  ;;  %238 = vst [vmem:[#allocation5 + $0x538] sm:$0xff] %v692_v13 }
  0xc5   :  { %240 = vst [vmem:[#allocation5 + $0x548] sm:$0xff] %v692_v13  ;;  %242 = vst [vmem:[#allocation5 + $0x558] sm:$0xff] %v692_v13 }
  0xc6   :  { %244 = vst [vmem:[#allocation5 + $0x568] sm:$0xff] %v692_v13  ;;  %246 = vst [vmem:[#allocation5 + $0x578] sm:$0xff] %v692_v13 }
  0xc7   :  { %248 = vst [vmem:[#allocation5 + $0x588] sm:$0xff] %v692_v13  ;;  %250 = vst [vmem:[#allocation5 + $0x598] sm:$0xff] %v692_v13 }
  0xc8   :  { %252 = vst [vmem:[#allocation5 + $0x5a8] sm:$0xff] %v692_v13  ;;  %254 = vst [vmem:[#allocation5 + $0x5b8] sm:$0xff] %v692_v13 }
  0xc9   :  { %256 = vst [vmem:[#allocation5 + $0x5c8] sm:$0xff] %v692_v13  ;;  %258 = vst [vmem:[#allocation5 + $0x5d8] sm:$0xff] %v692_v13 }
  0xca   :  { %260 = vst [vmem:[#allocation5 + $0x5e8] sm:$0xff] %v692_v13  ;;  %262 = vst [vmem:[#allocation5 + $0x5f8] sm:$0xff] %v692_v13 }
  0xcb   :  { %456 = vst [vmem:[#allocation5 + $0xc08] sm:$0xff] %v692_v13  ;;  %458 = vst [vmem:[#allocation5 + $0xc18] sm:$0xff] %v692_v13 }
  0xcc   :  { %460 = vst [vmem:[#allocation5 + $0xc28] sm:$0xff] %v692_v13  ;;  %462 = vst [vmem:[#allocation5 + $0xc38] sm:$0xff] %v692_v13 }
  0xcd   :  { %464 = vst [vmem:[#allocation5 + $0xc48] sm:$0xff] %v692_v13  ;;  %466 = vst [vmem:[#allocation5 + $0xc58] sm:$0xff] %v692_v13 }
  0xce   :  { %468 = vst [vmem:[#allocation5 + $0xc68] sm:$0xff] %v692_v13  ;;  %470 = vst [vmem:[#allocation5 + $0xc78] sm:$0xff] %v692_v13 }
  0xcf   :  { %472 = vst [vmem:[#allocation5 + $0xc88] sm:$0xff] %v692_v13  ;;  %474 = vst [vmem:[#allocation5 + $0xc98] sm:$0xff] %v692_v13 }
  0xd0   :  { %476 = vst [vmem:[#allocation5 + $0xca8] sm:$0xff] %v692_v13  ;;  %478 = vst [vmem:[#allocation5 + $0xcb8] sm:$0xff] %v692_v13 }
  0xd1   :  { %480 = vst [vmem:[#allocation5 + $0xcc8] sm:$0xff] %v692_v13  ;;  %482 = vst [vmem:[#allocation5 + $0xcd8] sm:$0xff] %v692_v13 }
  0xd2   :  { %484 = vst [vmem:[#allocation5 + $0xce8] sm:$0xff] %v692_v13  ;;  %486 = vst [vmem:[#allocation5 + $0xcf8] sm:$0xff] %v692_v13 }
  0xd3   :  { %488 = vst [vmem:[#allocation5 + $0xd08] sm:$0xff] %v692_v13  ;;  %490 = vst [vmem:[#allocation5 + $0xd18] sm:$0xff] %v692_v13 }
  0xd4   :  { %492 = vst [vmem:[#allocation5 + $0xd28] sm:$0xff] %v692_v13  ;;  %494 = vst [vmem:[#allocation5 + $0xd38] sm:$0xff] %v692_v13 }
  0xd5   :  { %496 = vst [vmem:[#allocation5 + $0xd48] sm:$0xff] %v692_v13  ;;  %498 = vst [vmem:[#allocation5 + $0xd58] sm:$0xff] %v692_v13 }
  0xd6   :  { %500 = vst [vmem:[#allocation5 + $0xd68] sm:$0xff] %v692_v13  ;;  %502 = vst [vmem:[#allocation5 + $0xd78] sm:$0xff] %v692_v13 }
  0xd7   :  { %504 = vst [vmem:[#allocation5 + $0xd88] sm:$0xff] %v692_v13  ;;  %506 = vst [vmem:[#allocation5 + $0xd98] sm:$0xff] %v692_v13 }
  0xd8   :  { %508 = vst [vmem:[#allocation5 + $0xda8] sm:$0xff] %v692_v13  ;;  %510 = vst [vmem:[#allocation5 + $0xdb8] sm:$0xff] %v692_v13 }
  0xd9   :  { %512 = vst [vmem:[#allocation5 + $0xdc8] sm:$0xff] %v692_v13  ;;  %514 = vst [vmem:[#allocation5 + $0xdd8] sm:$0xff] %v692_v13 }
  0xda   :  { %516 = vst [vmem:[#allocation5 + $0xde8] sm:$0xff] %v692_v13  ;;  %518 = vst [vmem:[#allocation5 + $0xdf8] sm:$0xff] %v692_v13 }
  0xdb   :  { %263 = vst [vmem:[#allocation5 + $0x600] sm:$0xff] %v694_v14  ;;  %265 = vst [vmem:[#allocation5 + $0x610] sm:$0xff] %v694_v14 }
  0xdc   :  { %267 = vst [vmem:[#allocation5 + $0x620] sm:$0xff] %v694_v14  ;;  %269 = vst [vmem:[#allocation5 + $0x630] sm:$0xff] %v694_v14 }
  0xdd   :  { %271 = vst [vmem:[#allocation5 + $0x640] sm:$0xff] %v694_v14  ;;  %273 = vst [vmem:[#allocation5 + $0x650] sm:$0xff] %v694_v14 }
  0xde   :  { %275 = vst [vmem:[#allocation5 + $0x660] sm:$0xff] %v694_v14  ;;  %277 = vst [vmem:[#allocation5 + $0x670] sm:$0xff] %v694_v14 }
  0xdf   :  { %279 = vst [vmem:[#allocation5 + $0x680] sm:$0xff] %v694_v14  ;;  %281 = vst [vmem:[#allocation5 + $0x690] sm:$0xff] %v694_v14 }
  0xe0   :  { %283 = vst [vmem:[#allocation5 + $0x6a0] sm:$0xff] %v694_v14  ;;  %285 = vst [vmem:[#allocation5 + $0x6b0] sm:$0xff] %v694_v14 }
  0xe1   :  { %287 = vst [vmem:[#allocation5 + $0x6c0] sm:$0xff] %v694_v14  ;;  %289 = vst [vmem:[#allocation5 + $0x6d0] sm:$0xff] %v694_v14 }
  0xe2   :  { %291 = vst [vmem:[#allocation5 + $0x6e0] sm:$0xff] %v694_v14  ;;  %293 = vst [vmem:[#allocation5 + $0x6f0] sm:$0xff] %v694_v14 }
  0xe3   :  { %295 = vst [vmem:[#allocation5 + $0x700] sm:$0xff] %v694_v14  ;;  %297 = vst [vmem:[#allocation5 + $0x710] sm:$0xff] %v694_v14 }
  0xe4   :  { %299 = vst [vmem:[#allocation5 + $0x720] sm:$0xff] %v694_v14  ;;  %301 = vst [vmem:[#allocation5 + $0x730] sm:$0xff] %v694_v14 }
  0xe5   :  { %303 = vst [vmem:[#allocation5 + $0x740] sm:$0xff] %v694_v14  ;;  %305 = vst [vmem:[#allocation5 + $0x750] sm:$0xff] %v694_v14 }
  0xe6   :  { %307 = vst [vmem:[#allocation5 + $0x760] sm:$0xff] %v694_v14  ;;  %309 = vst [vmem:[#allocation5 + $0x770] sm:$0xff] %v694_v14 }
  0xe7   :  { %311 = vst [vmem:[#allocation5 + $0x780] sm:$0xff] %v694_v14  ;;  %313 = vst [vmem:[#allocation5 + $0x790] sm:$0xff] %v694_v14 }
  0xe8   :  { %315 = vst [vmem:[#allocation5 + $0x7a0] sm:$0xff] %v694_v14  ;;  %317 = vst [vmem:[#allocation5 + $0x7b0] sm:$0xff] %v694_v14 }
  0xe9   :  { %319 = vst [vmem:[#allocation5 + $0x7c0] sm:$0xff] %v694_v14  ;;  %321 = vst [vmem:[#allocation5 + $0x7d0] sm:$0xff] %v694_v14 }
  0xea   :  { %323 = vst [vmem:[#allocation5 + $0x7e0] sm:$0xff] %v694_v14  ;;  %325 = vst [vmem:[#allocation5 + $0x7f0] sm:$0xff] %v694_v14 }
  0xeb   :  { %519 = vst [vmem:[#allocation5 + $0xe00] sm:$0xff] %v694_v14  ;;  %521 = vst [vmem:[#allocation5 + $0xe10] sm:$0xff] %v694_v14 }
  0xec   :  { %523 = vst [vmem:[#allocation5 + $0xe20] sm:$0xff] %v694_v14  ;;  %525 = vst [vmem:[#allocation5 + $0xe30] sm:$0xff] %v694_v14 }
  0xed   :  { %527 = vst [vmem:[#allocation5 + $0xe40] sm:$0xff] %v694_v14  ;;  %529 = vst [vmem:[#allocation5 + $0xe50] sm:$0xff] %v694_v14 }
  0xee   :  { %531 = vst [vmem:[#allocation5 + $0xe60] sm:$0xff] %v694_v14  ;;  %533 = vst [vmem:[#allocation5 + $0xe70] sm:$0xff] %v694_v14 }
  0xef   :  { %535 = vst [vmem:[#allocation5 + $0xe80] sm:$0xff] %v694_v14  ;;  %537 = vst [vmem:[#allocation5 + $0xe90] sm:$0xff] %v694_v14 }
  0xf0   :  { %539 = vst [vmem:[#allocation5 + $0xea0] sm:$0xff] %v694_v14  ;;  %541 = vst [vmem:[#allocation5 + $0xeb0] sm:$0xff] %v694_v14 }
  0xf1   :  { %543 = vst [vmem:[#allocation5 + $0xec0] sm:$0xff] %v694_v14  ;;  %545 = vst [vmem:[#allocation5 + $0xed0] sm:$0xff] %v694_v14 }
  0xf2   :  { %547 = vst [vmem:[#allocation5 + $0xee0] sm:$0xff] %v694_v14  ;;  %549 = vst [vmem:[#allocation5 + $0xef0] sm:$0xff] %v694_v14 }
  0xf3   :  { %551 = vst [vmem:[#allocation5 + $0xf00] sm:$0xff] %v694_v14  ;;  %553 = vst [vmem:[#allocation5 + $0xf10] sm:$0xff] %v694_v14 }
  0xf4   :  { %555 = vst [vmem:[#allocation5 + $0xf20] sm:$0xff] %v694_v14  ;;  %557 = vst [vmem:[#allocation5 + $0xf30] sm:$0xff] %v694_v14 }
  0xf5   :  { %559 = vst [vmem:[#allocation5 + $0xf40] sm:$0xff] %v694_v14  ;;  %561 = vst [vmem:[#allocation5 + $0xf50] sm:$0xff] %v694_v14 }
  0xf6   :  { %563 = vst [vmem:[#allocation5 + $0xf60] sm:$0xff] %v694_v14  ;;  %565 = vst [vmem:[#allocation5 + $0xf70] sm:$0xff] %v694_v14 }
  0xf7   :  { %567 = vst [vmem:[#allocation5 + $0xf80] sm:$0xff] %v694_v14  ;;  %569 = vst [vmem:[#allocation5 + $0xf90] sm:$0xff] %v694_v14 }
  0xf8   :  { %571 = vst [vmem:[#allocation5 + $0xfa0] sm:$0xff] %v694_v14  ;;  %573 = vst [vmem:[#allocation5 + $0xfb0] sm:$0xff] %v694_v14 }
  0xf9   :  { %575 = vst [vmem:[#allocation5 + $0xfc0] sm:$0xff] %v694_v14  ;;  %577 = vst [vmem:[#allocation5 + $0xfd0] sm:$0xff] %v694_v14 }
  0xfa   :  { %579 = vst [vmem:[#allocation5 + $0xfe0] sm:$0xff] %v694_v14  ;;  %581 = vst [vmem:[#allocation5 + $0xff0] sm:$0xff] %v694_v14 }
  0xfb   :  { %264 = vst [vmem:[#allocation5 + $0x608] sm:$0xff] %v696_v15  ;;  %266 = vst [vmem:[#allocation5 + $0x618] sm:$0xff] %v696_v15 }
  0xfc   :  { %268 = vst [vmem:[#allocation5 + $0x628] sm:$0xff] %v696_v15  ;;  %270 = vst [vmem:[#allocation5 + $0x638] sm:$0xff] %v696_v15 }
  0xfd   :  { %272 = vst [vmem:[#allocation5 + $0x648] sm:$0xff] %v696_v15  ;;  %274 = vst [vmem:[#allocation5 + $0x658] sm:$0xff] %v696_v15 }
  0xfe   :  { %276 = vst [vmem:[#allocation5 + $0x668] sm:$0xff] %v696_v15  ;;  %278 = vst [vmem:[#allocation5 + $0x678] sm:$0xff] %v696_v15 }
  0xff   :  { %280 = vst [vmem:[#allocation5 + $0x688] sm:$0xff] %v696_v15  ;;  %282 = vst [vmem:[#allocation5 + $0x698] sm:$0xff] %v696_v15 }
 0x100   :  { %284 = vst [vmem:[#allocation5 + $0x6a8] sm:$0xff] %v696_v15  ;;  %286 = vst [vmem:[#allocation5 + $0x6b8] sm:$0xff] %v696_v15 }
 0x101   :  { %288 = vst [vmem:[#allocation5 + $0x6c8] sm:$0xff] %v696_v15  ;;  %290 = vst [vmem:[#allocation5 + $0x6d8] sm:$0xff] %v696_v15 }
 0x102   :  { %292 = vst [vmem:[#allocation5 + $0x6e8] sm:$0xff] %v696_v15  ;;  %294 = vst [vmem:[#allocation5 + $0x6f8] sm:$0xff] %v696_v15 }
 0x103   :  { %296 = vst [vmem:[#allocation5 + $0x708] sm:$0xff] %v696_v15  ;;  %298 = vst [vmem:[#allocation5 + $0x718] sm:$0xff] %v696_v15 }
 0x104   :  { %300 = vst [vmem:[#allocation5 + $0x728] sm:$0xff] %v696_v15  ;;  %302 = vst [vmem:[#allocation5 + $0x738] sm:$0xff] %v696_v15 }
 0x105   :  { %304 = vst [vmem:[#allocation5 + $0x748] sm:$0xff] %v696_v15  ;;  %306 = vst [vmem:[#allocation5 + $0x758] sm:$0xff] %v696_v15 }
 0x106   :  { %308 = vst [vmem:[#allocation5 + $0x768] sm:$0xff] %v696_v15  ;;  %310 = vst [vmem:[#allocation5 + $0x778] sm:$0xff] %v696_v15 }
 0x107   :  { %312 = vst [vmem:[#allocation5 + $0x788] sm:$0xff] %v696_v15  ;;  %314 = vst [vmem:[#allocation5 + $0x798] sm:$0xff] %v696_v15 }
 0x108   :  { %316 = vst [vmem:[#allocation5 + $0x7a8] sm:$0xff] %v696_v15  ;;  %318 = vst [vmem:[#allocation5 + $0x7b8] sm:$0xff] %v696_v15 }
 0x109   :  { %320 = vst [vmem:[#allocation5 + $0x7c8] sm:$0xff] %v696_v15  ;;  %322 = vst [vmem:[#allocation5 + $0x7d8] sm:$0xff] %v696_v15 }
 0x10a   :  { %324 = vst [vmem:[#allocation5 + $0x7e8] sm:$0xff] %v696_v15  ;;  %326 = vst [vmem:[#allocation5 + $0x7f8] sm:$0xff] %v696_v15 }
 0x10b   :  { %520 = vst [vmem:[#allocation5 + $0xe08] sm:$0xff] %v696_v15  ;;  %522 = vst [vmem:[#allocation5 + $0xe18] sm:$0xff] %v696_v15 }
 0x10c   :  { %524 = vst [vmem:[#allocation5 + $0xe28] sm:$0xff] %v696_v15  ;;  %526 = vst [vmem:[#allocation5 + $0xe38] sm:$0xff] %v696_v15 }
 0x10d   :  { %528 = vst [vmem:[#allocation5 + $0xe48] sm:$0xff] %v696_v15  ;;  %530 = vst [vmem:[#allocation5 + $0xe58] sm:$0xff] %v696_v15 }
 0x10e   :  { %532 = vst [vmem:[#allocation5 + $0xe68] sm:$0xff] %v696_v15  ;;  %534 = vst [vmem:[#allocation5 + $0xe78] sm:$0xff] %v696_v15 }
 0x10f   :  { %536 = vst [vmem:[#allocation5 + $0xe88] sm:$0xff] %v696_v15  ;;  %538 = vst [vmem:[#allocation5 + $0xe98] sm:$0xff] %v696_v15 }
 0x110   :  { %540 = vst [vmem:[#allocation5 + $0xea8] sm:$0xff] %v696_v15  ;;  %542 = vst [vmem:[#allocation5 + $0xeb8] sm:$0xff] %v696_v15 }
 0x111   :  { %544 = vst [vmem:[#allocation5 + $0xec8] sm:$0xff] %v696_v15  ;;  %546 = vst [vmem:[#allocation5 + $0xed8] sm:$0xff] %v696_v15 }
 0x112   :  { %548 = vst [vmem:[#allocation5 + $0xee8] sm:$0xff] %v696_v15  ;;  %550 = vst [vmem:[#allocation5 + $0xef8] sm:$0xff] %v696_v15 }
 0x113   :  { %552 = vst [vmem:[#allocation5 + $0xf08] sm:$0xff] %v696_v15  ;;  %554 = vst [vmem:[#allocation5 + $0xf18] sm:$0xff] %v696_v15 }
 0x114   :  { %556 = vst [vmem:[#allocation5 + $0xf28] sm:$0xff] %v696_v15  ;;  %558 = vst [vmem:[#allocation5 + $0xf38] sm:$0xff] %v696_v15 }
 0x115   :  { %560 = vst [vmem:[#allocation5 + $0xf48] sm:$0xff] %v696_v15  ;;  %562 = vst [vmem:[#allocation5 + $0xf58] sm:$0xff] %v696_v15 }
 0x116   :  { %564 = vst [vmem:[#allocation5 + $0xf68] sm:$0xff] %v696_v15  ;;  %566 = vst [vmem:[#allocation5 + $0xf78] sm:$0xff] %v696_v15 }
 0x117   :  { %568 = vst [vmem:[#allocation5 + $0xf88] sm:$0xff] %v696_v15  ;;  %570 = vst [vmem:[#allocation5 + $0xf98] sm:$0xff] %v696_v15 }
 0x118   :  { %572 = vst [vmem:[#allocation5 + $0xfa8] sm:$0xff] %v696_v15  ;;  %574 = vst [vmem:[#allocation5 + $0xfb8] sm:$0xff] %v696_v15 }
 0x119   :  { %576 = vst [vmem:[#allocation5 + $0xfc8] sm:$0xff] %v696_v15  ;;  %578 = vst [vmem:[#allocation5 + $0xfd8] sm:$0xff] %v696_v15 }
 0x11a   :  { %580 = vst [vmem:[#allocation5 + $0xfe8] sm:$0xff] %v696_v15  ;;  %582 = vst [vmem:[#allocation5 + $0xff8] sm:$0xff] %v696_v15 }
 0x11b   :  { %639 = shalt.err (!%p636_p12)
}
 0x11c   :  { %s640_s24 = scalar_lea.hbm %s1230_s1, 65536 }
 0x11d   :  { %p641_p13 = scmp.ne.s32.totalorder %s1230_s1, %s640_s24  ;;  %p644_p0 = scmp.lt.u32.totalorder %s640_s24, %s1230_s1 }
 0x11f   :  { %p646_p1 = pnand %p644_p0, %p641_p13 }
 0x121   :  { %649 = shalt.err (!%p646_p1)
}
 0x122   :  { %s658_s29 = smov 256   ;;  %s659_s30 = smov 16  }
 0x123   :  { %594 = dma.vmem_to_hbm [thread:$0]  %s698_s21, 65536, %s1230_s1, [#allocation4], %s658_s29, %s658_s29, %s659_s30  }
 0x124   :  { %652 = dma.done.wait [#allocation4], 65536  }
 0x125   :  { %653 = vsyncadd [#allocation4], 4294901760 }
 0x126   :  { %598 = vsyncpa [#allocation3], 1 }
 0x127   :  { %599 = vsyncpa [#allocation4], 1 }

</bundles_post_ra>
